<compile_context>
chip_gen: v6e
topology: v6e:2x2x1
jax: 0.10.0
libtpu: 0.0.40
codegen_flags: <defaults>
</compile_context>

<pallas_src>
import functools

import jax
import jax.numpy as jnp
from jax.experimental import pallas as pl
from jax.experimental.pallas import tpu as pltpu


def _copy_kernel(x_ref, o_ref):
    # Both refs are (cpg, T_HW) VMEM tiles; the permutation is fully encoded
    # in the BlockSpec index_maps, so this is a plain copy.
    o_ref[...] = x_ref[...]


def _pick_hw_tile(hw: int, cpg: int, itemsize: int, max_block_bytes: int) -> int:
    """Largest divisor of hw keeping a (cpg, tile) block under max_block_bytes;
    prefer lane-aligned (multiple-of-128) tiles."""
    if cpg * hw * itemsize <= max_block_bytes:
        return hw
    best_any, best_aligned = 1, None
    for d in range(1, hw + 1):
        if hw % d == 0 and cpg * d * itemsize <= max_block_bytes:
            best_any = d
            if d % 128 == 0:
                best_aligned = d
    return best_aligned if best_aligned is not None else best_any


def channel_shuffle_ref(x: jax.Array, groups: int) -> jax.Array:
    """Plain-JAX reference matching the PyTorch forward exactly."""
    n, c, h, w = x.shape
    x = x.reshape(n, groups, c // groups, h, w)
    x = jnp.transpose(x, (0, 2, 1, 3, 4))
    return x.reshape(n, c, h, w)


@functools.partial(
    jax.jit, static_argnames=("groups", "force_pallas", "max_block_bytes")
)
def channel_shuffle(
    x: jax.Array,
    groups: int,
    *,
    force_pallas: bool = False,
    max_block_bytes: int = 2 * 1024 * 1024,
) -> jax.Array:
    """Pallas TPU implementation of ChannelShuffle.forward (NCHW)."""
    n, c, h, w = x.shape
    assert c % groups == 0, "channels must be divisible by groups"
    cpg = c // groups  # channels per group
    hw = h * w
    itemsize = x.dtype.itemsize

    # Small-problem fallback: for tiny tensors the pallas_call launch overhead
    # exceeds a fused XLA transpose. (The __main__ check forces the kernel.)
    if not force_pallas and n * c * hw * itemsize < (256 << 10):
        return channel_shuffle_ref(x, groups)

    t_hw = _pick_hw_tile(hw, cpg, itemsize, max_block_bytes)
    n_hw = hw // t_hw

    # Contiguous view of the input: (n, g, cpg, h*w). Free reshape.
    x4 = x.reshape(n, groups, cpg, hw)

    grid = (n, groups, n_hw)

    # Input block: one (cpg, T_HW) slab of group gi (contiguous in HBM).
    in_spec = pl.BlockSpec(
        (None, None, cpg, t_hw),
        lambda bi, gi, si: (bi, gi, 0, si),
    )
    # Output view is (n, cpg, g*h*w); writing block column gi*n_hw + si places
    # group gi's spatial tile at offset gi*hw + si*t_hw of every cpg row,
    # which is exactly the transposed (n, cpg, g, h*w) layout.
    out_spec = pl.BlockSpec(
        (None, cpg, t_hw),
        lambda bi, gi, si: (bi, 0, gi * n_hw + si),
    )

    out3 = pl.pallas_call(
        _copy_kernel,
        out_shape=jax.ShapeDtypeStruct((n, cpg, groups * hw), x.dtype),
        grid_spec=pl.GridSpec(grid=grid, in_specs=[in_spec], out_specs=out_spec),
        compiler_params=pltpu.CompilerParams(
            dimension_semantics=("parallel", "parallel", "arbitrary"),
        ),
        cost_estimate=pl.CostEstimate(
            flops=0,
            transcendentals=0,
            bytes_accessed=2 * n * c * hw * itemsize,
        ),
    )(x4)

    # (n, cpg, g*h*w) row-major is bitwise identical to (n, c, h, w) with
    # channel j = i2*g + i1, so this reshape is free.
    return out3.reshape(n, c, h, w)


if __name__ == "__main__":
    key = jax.random.PRNGKey(0)
    # Small, module-consistent shapes: batch=2, channels=4, spatial=16, groups=2.
    x = jax.random.normal(key, (2, 4, 16, 16), dtype=jnp.float32)
    groups = 2

    out = channel_shuffle(x, groups=groups, force_pallas=True)
    out = jax.block_until_ready(out)

    ref = channel_shuffle_ref(x, groups)
    assert out.shape == ref.shape and out.dtype == ref.dtype
    assert bool(jnp.array_equal(out, ref)), "Pallas channel shuffle mismatch"

    print("KERNEL_OK")
</pallas_src>

<mosaic_0001>
module attributes {stable_mosaic.version = 11 : i64} {
  func.func @_copy_kernel(%arg0: i32, %arg1: i32, %arg2: i32, %arg3: memref<1x1x2x256xf32, #tpu.memory_space<vmem>>, %arg4: memref<1x2x256xf32, #tpu.memory_space<vmem>>) attributes {dimension_semantics = [#tpu.dimension_semantics<parallel>, #tpu.dimension_semantics<parallel>, #tpu.dimension_semantics<arbitrary>], iteration_bounds = array<i64: 2, 2, 1>, scalar_prefetch = 0 : i64, scratch_operands = 0 : i64, tpu.core_type = #tpu.core_type<tc>, window_params = [{transform_indices = @transform_0, window_bounds = array<i64: 1, 1, 2, 256>}, {transform_indices = @transform_1, window_bounds = array<i64: 1, 2, 256>}]} {
    %c0 = arith.constant 0 : index
    %c0_0 = arith.constant 0 : index
    %c0_1 = arith.constant 0 : index
    %c0_2 = arith.constant 0 : index
    %0 = vector.load %arg3[%c0, %c0_0, %c0_1, %c0_2] : memref<1x1x2x256xf32, #tpu.memory_space<vmem>>, vector<1x1x2x256xf32>
    %1 = vector.shape_cast %0 : vector<1x1x2x256xf32> to vector<2x256xf32>
    %c0_3 = arith.constant 0 : index
    %c0_4 = arith.constant 0 : index
    %c0_5 = arith.constant 0 : index
    %2 = vector.load %arg4[%c0_3, %c0_4, %c0_5] : memref<1x2x256xf32, #tpu.memory_space<vmem>>, vector<1x2x256xf32>
    %3 = vector.shape_cast %2 : vector<1x2x256xf32> to vector<2x256xf32>
    %4 = vector.shape_cast %1 : vector<2x256xf32> to vector<1x2x256xf32>
    tpu.vector_store %arg4[%c0_3, %c0_4, %c0_5], %4 {strides = array<i32>} : memref<1x2x256xf32, #tpu.memory_space<vmem>>, vector<1x2x256xf32>,
    return
  }
  func.func @transform_0(%arg0: i32, %arg1: i32, %arg2: i32) -> (i32, i32, i32, i32) {
    %c0_i32 = arith.constant 0 : i32
    %c0_i32_0 = arith.constant 0 : i32
    return %arg0, %arg1, %c0_i32, %arg2 : i32, i32, i32, i32
  }
  func.func @transform_1(%arg0: i32, %arg1: i32, %arg2: i32) -> (i32, i32, i32) {
    %c1_i32 = arith.constant 1 : i32
    %0 = arith.muli %arg1, %c1_i32 : i32
    %1 = arith.addi %0, %arg2 : i32
    %c0_i32 = arith.constant 0 : i32
    %c0_i32_0 = arith.constant 0 : i32
    return %arg0, %c0_i32, %1 : i32, i32, i32
  }
}

</mosaic_0001>

<bundles_post_ra>
// kernel: channel_shuffle.1
= control target key start
LH: loop header
LB: loop body
LE: loop exit
PB: predicated region body
PF: predicated region fallthrough
CT: control target
= control target key end

     0   :  { %s389_s6 = smov 0   ;;  %s391_s7 = smov 0   ;;  %s434_s0 = inlined_call_operand.vmem [shape: f32[2,2,2,256], index: 0, kind: input, shape index: {}]   ;;  %s435_s1 = inlined_call_operand.vmem [shape: f32[2,2,512], index: 1, kind: output, shape index: {}]  }
   0x1   :  { %s393_s8 = smov 0   ;;  %s395_s9 = smov 0  }
   0x2   :  { %s397_s10 = smov 0  }
   0x3 LB: > { %s26_s11 = sadd.s32 1, %s369_s8  ;;  %s30_s12 = sadd.s32 1, %s373_s9  ;;  %s377_s10 = sphi %s397_s10, %s11_s10   ;;  %s373_s9 = sphi %s395_s9, %s439_s9   ;;  %s369_s8 = sphi %s393_s8, %s438_s8   ;;  %s365_s7 = sphi %s391_s7, %s437_s7   ;;  %s361_s6 = sphi %s389_s6, %s436_s6  }
   0x4   : > { %p28_p0 = scmp.ge.s32.totalorder %s26_s11, 2  ;;  %p290_p1 = scmp.ge.s32.totalorder %s377_s10, 1 }
   0x5   : > { %p123_p2 = scmp.lt.s32.totalorder %s377_s10, 5 }
   0x6   : > { %s441_s11 = smov (%p28_p0, %s26_s11), 0  ;;  %s443_s12 = smov (!%p28_p0, %s30_s12), %s373_s9 }
   0x7   : > { %p124_p3 = pnand %p290_p1, %p123_p2  ;;  %p32_p4 = scmp.ge.s32.totalorder %s443_s12, 2 }
   0x8   : > { %p157_p5 = scmp.lt.s32.totalorder (!%p124_p3), %s365_s7, 1  ;;  %p159_p6 = scmp.lt.s32.totalorder (!%p124_p3), %s361_s6, 1 }
   0x9   : > { %s445_s12 = smov (%p32_p4, %s443_s12), 0  ;;  %127 = sbr.rel (%p124_p3) target bundleno = 21 (0x15), region = 24 }
   0xa   : > { %s294_s13 = sshll.u32 (!%p124_p3), %s361_s6, 1 }
   0xb   : > { %p174_p7 = scmp.lt.s32.totalorder (!%p124_p3), %s294_s13, 3 }
   0xe   : > { %s447_s7 = smov (!%p157_p5, %s365_s7), 1  ;;  %s449_s6 = smov (!%p159_p6, %s361_s6), 1 }
   0xf   : > { %s292_s14 = sshll.u32 %s447_s7, 2  ;;  %s291_s15 = sshll.u32 %s449_s6, 1 }
  0x10   : > { %s166_s16 = sadd.s32 %s292_s14, %s291_s15  ;;  %s451_s13 = smov (!%p174_p7, %s294_s13), 3 }
  0x11   : > { %s293_s17 = sshll.u32 %s166_s16, 1  ;;  %s177_s21 = sadd.s32 %s292_s14, %s451_s13 }
  0x12   : > { %s168_s20 = scalar_lea.vmem %s434_s0, %s293_s17  ;;  %s296_s22 = sshll.u32 %s177_s21, 1 }
  0x13   : > { %v182_v0 = vld [vmem:[%s168_s20] sm:$0xf]  ;;  %s179_s25 = scalar_lea.vmem %s435_s1, %s296_s22 }
  0x14   : > { %183 = vst [vmem:[%s179_s25] sm:$0xf] %v182_v0 }
  0x15 PF: > { %s11_s10 = sadd.s32 1, %s377_s10   ;;  %s436_s6 = smov %s369_s8 }
  0x16   : > { %p8_p8 = scmp.ge.s32.totalorder %s11_s10, 6   ;;  %s437_s7 = smov %s373_s9 }
  0x17   : > { %s438_s8 = smov %s441_s11  ;;  %s439_s9 = smov %s445_s12 }
  0x18   :  { %10 = sbr.rel (!%p8_p8) target bundleno = 3 (0x3), region = 54 }

</bundles_post_ra>
